<compile_context>
chip_gen: v5e
topology: v5e:2x2
jax: 0.10.0
libtpu: 0.0.40
codegen_flags: <defaults>
</compile_context>

<pallas_src>
import functools

import jax
import jax.numpy as jnp
from jax import lax
from jax.experimental import pallas as pl
from jax.experimental.pallas import tpu as pltpu


def _softmax_lastdim(x):
    # numerically-stable softmax over the lane axis; divide goes to the EUP.
    m = jnp.max(x, axis=-1, keepdims=True)
    e = jnp.exp(x - m)
    return e * pl.reciprocal(jnp.sum(e, axis=-1, keepdims=True), approx=True)


def vitime_kernel(x_ref, w_mae_ref, b_mae_ref, w_rfn_ref, b_rfn_ref, o_ref,
                  *, size0, W):
    x = x_ref[...]                                    # (tm, H) float32
    tm, H = x.shape

    # ---- MAE / ViTimeAutoencoder stand-in ----------------------------------
    # TODO(synk): ViTimeAutoencoder source not provided; stand-in is a
    # per-row linear over the pixel axis (shape-preserving).
    # Weights/bias are pre-scaled by 1/10 in the wrapper (folded softmax scale),
    # MXU operands are bf16, accumulation f32.
    y = jnp.dot(x.astype(jnp.bfloat16), w_mae_ref[...],
                preferred_element_type=jnp.float32) + b_mae_ref[...]

    # x = EMD(x / 10)  (softmax over last dim; /10 already folded into weights)
    s = _softmax_lastdim(y)

    # mask = ones_like(x[0]); mask[:, :size[0], :] = 0  (zero first size0 rows
    # of the w axis).  Rows here are the flattened (batch, w) axis, so the
    # w-index of a global row is (global_row % W).  Fused mask+residual select:
    grow = pl.program_id(0) * tm + lax.broadcasted_iota(jnp.int32, (tm, H), 0)
    row_in_w = lax.rem(grow, jnp.int32(W))
    z = jnp.where(row_in_w >= size0, 20.0 * s + x, x)   # 20*s*mask + xO

    # ---- RefiningModel (DeepLab) stand-in -----------------------------------
    # TODO(synk): RefiningModel source not provided; stand-in is another
    # per-row linear over the pixel axis (shape-preserving).
    # Weights/bias pre-scaled by 1/temperature in the wrapper.
    r = jnp.dot(z.astype(jnp.bfloat16), w_rfn_ref[...],
                preferred_element_type=jnp.float32) + b_rfn_ref[...]

    # x2 = EMD(r / 10) is computed and discarded in the PyTorch forward; skipped.
    # x = EMD(r / temparture)  (1/temperature already folded into weights)
    o_ref[...] = _softmax_lastdim(r)


def _pick_tm(M, max_tm=512):
    """Largest multiple-of-8 divisor of M <= max_tm that leaves >= 2 grid steps."""
    best = None
    for tm in range(8, min(M, max_tm) + 1, 8):
        if M % tm == 0 and M // tm >= 2:
            best = tm
    return best if best is not None else M


def vitime_forward(x, w_mae, b_mae, w_rfn, b_rfn, *, size0, temperature=1.0):
    bs, c, W, H = x.shape
    M = bs * c * W
    xf = x.reshape(M, H).astype(jnp.float32)

    # Fold the pre-softmax scales into the stand-in weights/biases once here.
    inv_t = 1.0 / float(temperature)
    w_mae_s = (w_mae.astype(jnp.float32) * 0.1).astype(jnp.bfloat16)
    b_mae_s = (b_mae.astype(jnp.float32) * 0.1)
    w_rfn_s = (w_rfn.astype(jnp.float32) * inv_t).astype(jnp.bfloat16)
    b_rfn_s = (b_rfn.astype(jnp.float32) * inv_t)

    tm = _pick_tm(M)
    grid = (M // tm,)

    kernel = functools.partial(vitime_kernel, size0=int(size0), W=int(W))

    out = pl.pallas_call(
        kernel,
        out_shape=jax.ShapeDtypeStruct((M, H), jnp.float32),
        grid_spec=pltpu.PrefetchScalarGridSpec(
            num_scalar_prefetch=0,
            grid=grid,
            in_specs=[
                pl.BlockSpec((tm, H), lambda i: (i, 0)),      # activations (row tile)
                pl.BlockSpec((H, H), lambda i: (0, 0)),        # w_mae (bf16, resident)
                pl.BlockSpec((1, H), lambda i: (0, 0)),        # b_mae (f32)
                pl.BlockSpec((H, H), lambda i: (0, 0)),        # w_rfn (bf16, resident)
                pl.BlockSpec((1, H), lambda i: (0, 0)),        # b_rfn (f32)
            ],
            out_specs=pl.BlockSpec((tm, H), lambda i: (i, 0)),
        ),
        compiler_params=pltpu.CompilerParams(
            dimension_semantics=("parallel",)),                # >=2 steps -> both TCs busy
    )(xf, w_mae_s, b_mae_s, w_rfn_s, b_rfn_s)

    return out.reshape(bs, c, W, H)


def vitime_reference(x, w_mae, b_mae, w_rfn, b_rfn, *, size0, temperature=1.0):
    """Pure-JAX f32 reference mirroring the PyTorch forward."""
    bs, c, W, H = x.shape
    xf = x.reshape(bs * c, W, H).astype(jnp.float32)
    xO = xf
    y = jnp.einsum("bwh,hk->bwk", xf, w_mae) + b_mae[0]
    s = jax.nn.softmax(y / 10.0, axis=-1)
    mask = (jnp.arange(W) >= size0).astype(jnp.float32)[None, :, None]
    z = 20.0 * s * mask + xO
    r = jnp.einsum("bwh,hk->bwk", z, w_rfn) + b_rfn[0]
    out = jax.nn.softmax(r / temperature, axis=-1)
    return out.reshape(bs, c, W, H)


if __name__ == "__main__":
    # small shapes consistent with the module's (bs, c, w, h) input
    bs, c, W, H = 2, 4, 32, 128
    size0 = 16          # args.size[0]  (history length along w)
    temperature = 1.0

    key = jax.random.PRNGKey(0)
    kx, k1, k2, k3, k4 = jax.random.split(key, 5)

    x = jax.random.normal(kx, (bs, c, W, H), dtype=jnp.float32)
    w_mae = jax.random.normal(k1, (H, H), dtype=jnp.float32) * 0.05
    b_mae = jax.random.normal(k2, (1, H), dtype=jnp.float32) * 0.01
    w_rfn = jax.random.normal(k3, (H, H), dtype=jnp.float32) * 0.05
    b_rfn = jax.random.normal(k4, (1, H), dtype=jnp.float32) * 0.01

    out = vitime_forward(x, w_mae, b_mae, w_rfn, b_rfn,
                         size0=size0, temperature=temperature)
    out = jax.block_until_ready(out)

    ref = vitime_reference(x, w_mae, b_mae, w_rfn, b_rfn,
                           size0=size0, temperature=temperature)

    assert out.shape == (bs, c, W, H)
    # bf16 MXU operands + approx reciprocal => relaxed tolerance vs f32 reference
    assert jnp.allclose(out, ref, atol=2e-2, rtol=2e-2), "mismatch vs reference"
    print("KERNEL_OK")
</pallas_src>

<mosaic_0001>
module attributes {stable_mosaic.version = 11 : i64} {
  func.func @vitime_kernel(%arg0: i32, %arg1: memref<128x128xf32, #tpu.memory_space<vmem>>, %arg2: memref<128x128xbf16, #tpu.memory_space<vmem>>, %arg3: memref<1x128xf32, #tpu.memory_space<vmem>>, %arg4: memref<128x128xbf16, #tpu.memory_space<vmem>>, %arg5: memref<1x128xf32, #tpu.memory_space<vmem>>, %arg6: memref<128x128xf32, #tpu.memory_space<vmem>>) attributes {dimension_semantics = [#tpu.dimension_semantics<parallel>], iteration_bounds = array<i64: 2>, scalar_prefetch = 0 : i64, scratch_operands = 0 : i64, tpu.core_type = #tpu.core_type<tc>, window_params = [{transform_indices = @transform_0, window_bounds = array<i64: 128, 128>}, {pipeline_mode = #tpu.pipeline_mode<synchronous>, transform_indices = @transform_1, window_bounds = array<i64: 128, 128>}, {pipeline_mode = #tpu.pipeline_mode<synchronous>, transform_indices = @transform_2, window_bounds = array<i64: 1, 128>}, {pipeline_mode = #tpu.pipeline_mode<synchronous>, transform_indices = @transform_3, window_bounds = array<i64: 128, 128>}, {pipeline_mode = #tpu.pipeline_mode<synchronous>, transform_indices = @transform_4, window_bounds = array<i64: 1, 128>}, {transform_indices = @transform_5, window_bounds = array<i64: 128, 128>}]} {
    %c0 = arith.constant 0 : index
    %c0_0 = arith.constant 0 : index
    %0 = vector.load %arg1[%c0, %c0_0] : memref<128x128xf32, #tpu.memory_space<vmem>>, vector<128x128xf32>
    %1 = arith.truncf %0 : vector<128x128xf32> to vector<128x128xbf16>
    %c0_1 = arith.constant 0 : index
    %c0_2 = arith.constant 0 : index
    %2 = vector.load %arg2[%c0_1, %c0_2] : memref<128x128xbf16, #tpu.memory_space<vmem>>, vector<128x128xbf16>
    %cst = arith.constant dense<0.000000e+00> : vector<128x128xf32>
    %3 = tpu.matmul %1, %2, %cst {dimension_numbers = #tpu.dot_dimension_numbers<[1], [0], [0], [1], [0, 0, 1, 1], [], []>} : vector<128x128xbf16>, vector<128x128xbf16>, vector<128x128xf32> -> vector<128x128xf32>
    %c0_3 = arith.constant 0 : index
    %c0_4 = arith.constant 0 : index
    %4 = vector.load %arg3[%c0_3, %c0_4] : memref<1x128xf32, #tpu.memory_space<vmem>>, vector<1x128xf32>
    %5 = vector.broadcast %4 : vector<1x128xf32> to vector<128x128xf32>
    %6 = arith.addf %3, %5 : vector<128x128xf32>
    %cst_5 = arith.constant dense<0xFF800000> : vector<128xf32>
    %7 = vector.multi_reduction <maximumf>, %6, %cst_5 [1] : vector<128x128xf32> to vector<128xf32>
    %8 = vector.shape_cast %7 : vector<128xf32> to vector<128x1xf32>
    %9 = vector.broadcast %8 : vector<128x1xf32> to vector<128x128xf32>
    %10 = arith.subf %6, %9 : vector<128x128xf32>
    %11 = math.exp %10 : vector<128x128xf32>
    %cst_6 = arith.constant dense<0.000000e+00> : vector<128xf32>
    %12 = vector.multi_reduction <add>, %11, %cst_6 [1] : vector<128x128xf32> to vector<128xf32>
    %13 = vector.shape_cast %12 : vector<128xf32> to vector<128x1xf32>
    %14 = tpu.reciprocal %13 {approx = true} : vector<128x1xf32> -> vector<128x1xf32>
    %15 = vector.broadcast %14 : vector<128x1xf32> to vector<128x128xf32>
    %16 = arith.mulf %11, %15 : vector<128x128xf32>
    %c128_i32 = arith.constant 128 : i32
    %17 = arith.muli %arg0, %c128_i32 : i32
    %18 = tpu.iota {dimensions = array<i32: 0>} : vector<128x128xi32>
    %19 = vector.broadcast %17 : i32 to vector<128x128xi32>
    %20 = arith.addi %19, %18 : vector<128x128xi32>
    %c32_i32 = arith.constant 32 : i32
    %21 = vector.broadcast %c32_i32 : i32 to vector<128x128xi32>
    %22 = arith.remsi %20, %21 : vector<128x128xi32>
    %c16_i32 = arith.constant 16 : i32
    %23 = vector.broadcast %c16_i32 : i32 to vector<128x128xi32>
    %24 = arith.cmpi sge, %22, %23 : vector<128x128xi32>
    %cst_7 = arith.constant 2.000000e+01 : f32
    %25 = vector.broadcast %cst_7 : f32 to vector<128x128xf32>
    %26 = arith.mulf %25, %16 : vector<128x128xf32>
    %27 = arith.addf %26, %0 : vector<128x128xf32>
    %28 = arith.select %24, %27, %0 : vector<128x128xi1>, vector<128x128xf32>
    %29 = arith.truncf %28 : vector<128x128xf32> to vector<128x128xbf16>
    %c0_8 = arith.constant 0 : index
    %c0_9 = arith.constant 0 : index
    %30 = vector.load %arg4[%c0_8, %c0_9] : memref<128x128xbf16, #tpu.memory_space<vmem>>, vector<128x128xbf16>
    %cst_10 = arith.constant dense<0.000000e+00> : vector<128x128xf32>
    %31 = tpu.matmul %29, %30, %cst_10 {dimension_numbers = #tpu.dot_dimension_numbers<[1], [0], [0], [1], [0, 0, 1, 1], [], []>} : vector<128x128xbf16>, vector<128x128xbf16>, vector<128x128xf32> -> vector<128x128xf32>
    %c0_11 = arith.constant 0 : index
    %c0_12 = arith.constant 0 : index
    %32 = vector.load %arg5[%c0_11, %c0_12] : memref<1x128xf32, #tpu.memory_space<vmem>>, vector<1x128xf32>
    %33 = vector.broadcast %32 : vector<1x128xf32> to vector<128x128xf32>
    %34 = arith.addf %31, %33 : vector<128x128xf32>
    %cst_13 = arith.constant dense<0xFF800000> : vector<128xf32>
    %35 = vector.multi_reduction <maximumf>, %34, %cst_13 [1] : vector<128x128xf32> to vector<128xf32>
    %36 = vector.shape_cast %35 : vector<128xf32> to vector<128x1xf32>
    %37 = vector.broadcast %36 : vector<128x1xf32> to vector<128x128xf32>
    %38 = arith.subf %34, %37 : vector<128x128xf32>
    %39 = math.exp %38 : vector<128x128xf32>
    %cst_14 = arith.constant dense<0.000000e+00> : vector<128xf32>
    %40 = vector.multi_reduction <add>, %39, %cst_14 [1] : vector<128x128xf32> to vector<128xf32>
    %41 = vector.shape_cast %40 : vector<128xf32> to vector<128x1xf32>
    %42 = tpu.reciprocal %41 {approx = true} : vector<128x1xf32> -> vector<128x1xf32>
    %43 = vector.broadcast %42 : vector<128x1xf32> to vector<128x128xf32>
    %44 = arith.mulf %39, %43 : vector<128x128xf32>
    %c0_15 = arith.constant 0 : index
    %c0_16 = arith.constant 0 : index
    %45 = vector.load %arg6[%c0_15, %c0_16] : memref<128x128xf32, #tpu.memory_space<vmem>>, vector<128x128xf32>
    tpu.vector_store %arg6[%c0_15, %c0_16], %44 {strides = array<i32>} : memref<128x128xf32, #tpu.memory_space<vmem>>, vector<128x128xf32>,
    return
  }
  func.func @transform_0(%arg0: i32) -> (i32, i32) {
    %c0_i32 = arith.constant 0 : i32
    %c0_i32_0 = arith.constant 0 : i32
    return %arg0, %c0_i32 : i32, i32
  }
  func.func @transform_1(%arg0: i32) -> (i32, i32) {
    %c0_i32 = arith.constant 0 : i32
    %c0_i32_0 = arith.constant 0 : i32
    %c0_i32_1 = arith.constant 0 : i32
    return %c0_i32, %c0_i32_0 : i32, i32
  }
  func.func @transform_2(%arg0: i32) -> (i32, i32) {
    %c0_i32 = arith.constant 0 : i32
    %c0_i32_0 = arith.constant 0 : i32
    %c0_i32_1 = arith.constant 0 : i32
    return %c0_i32, %c0_i32_0 : i32, i32
  }
  func.func @transform_3(%arg0: i32) -> (i32, i32) {
    %c0_i32 = arith.constant 0 : i32
    %c0_i32_0 = arith.constant 0 : i32
    %c0_i32_1 = arith.constant 0 : i32
    return %c0_i32, %c0_i32_0 : i32, i32
  }
  func.func @transform_4(%arg0: i32) -> (i32, i32) {
    %c0_i32 = arith.constant 0 : i32
    %c0_i32_0 = arith.constant 0 : i32
    %c0_i32_1 = arith.constant 0 : i32
    return %c0_i32, %c0_i32_0 : i32, i32
  }
  func.func @transform_5(%arg0: i32) -> (i32, i32) {
    %c0_i32 = arith.constant 0 : i32
    %c0_i32_0 = arith.constant 0 : i32
    return %arg0, %c0_i32 : i32, i32
  }
}

</mosaic_0001>

<bundles_post_ra>
// kernel: tpu_custom_call.1
= control target key start
LH: loop header
LB: loop body
LE: loop exit
PB: predicated region body
PF: predicated region fallthrough
CT: control target
= control target key end

     0   :  { %10 = vsyncpa [#allocation3], 0  ;;  %s2346_s0 = inlined_call_operand.hbm [shape: f32[256,128], index: 0, kind: input, shape index: {}]   ;;  %s2347_s1 = inlined_call_operand.hbm [shape: bf16[128,128], index: 1, kind: input, shape index: {}]   ;;  %s2348_s2 = inlined_call_operand.vmem [shape: f32[1,128], index: 2, kind: input, shape index: {}]   ;;  %s2349_s3 = inlined_call_operand.hbm [shape: bf16[128,128], index: 3, kind: input, shape index: {}]   ;;  %s2350_s4 = inlined_call_operand.vmem [shape: f32[1,128], index: 4, kind: input, shape index: {}]   ;;  %s2351_s5 = inlined_call_operand.hbm [shape: f32[256,128], index: 5, kind: output, shape index: {}]  }
   0x1   :  { %12 = vsyncpa [#allocation3 + $0x1], 0 }
   0x2   :  { %13 = vsyncpa [#allocation6], 0 }
   0x3   :  { %14 = vsyncpa [#allocation4], 0 }
   0x4   :  { %16 = vsyncpa [#allocation4 + $0x1], 0  ;;  %s1689_s18 = smov 0   ;;  %s1691_s19 = smov 0  }
   0x5   :  { %s1693_s20 = smov 0   ;;  %s1695_s21 = smov 0  }
   0x6 LB: > { %s1710_s22 = sadd.s32 4294967295, %s1649_s21   ;;  %s1169_s23 = sadd.s32 4294967294, %s1649_s21   ;;  %s1649_s21 = sphi %s1695_s21, %s2361_s21   ;;  %s1645_s20 = sphi %s1693_s20, %s2360_s20   ;;  %s1641_s19 = sphi %s1691_s19, %s2359_s19   ;;  %s1637_s18 = sphi %s1689_s18, %s2358_s18  }
   0x7   : > { %p42_p0 = scmp.ne.s32.totalorder %s1641_s19, %s1637_s18  ;;  %p43_p1 = scmp.eq.s32.totalorder %s1710_s22, 0 }
   0x8   : > { %p150_p2 = scmp.eq.s32.totalorder %s1710_s22, 1  ;;  %p156_p3 = scmp.eq.s32.totalorder %s1169_s23, 1 }
   0x9   : > { %p1719_p4 = por %p43_p1, %p42_p0  ;;  %p1170_p5 = scmp.ge.s32.totalorder %s1649_s21, 1 }
   0xa   : > { %p1724_p6 = por %p156_p3, %p42_p0  ;;  %p163_p7 = scmp.lt.s32.totalorder %s1649_s21, 3 }
   0xb   : > { %s174_s28 = sshll.u32 %s2347_s1, 4  ;;  %s1651_s30 = smov [#allocation5]   ;;  %s175_s28 = int_to_ptr.hbm [resolvable:$true] %s174_s28 }
   0xc   : > { %p1732_p8 = pnand %p1170_p5, %p163_p7  ;;  %s176_s6 = sshll.u32 %s1651_s30, 4  ;;  %s177_s6 = int_to_ptr.vmem [resolvable:$true] %s176_s6 }
   0xd   : > { %s191_s9 = sshll.u32 %s2349_s3, 4  ;;  %s1652_s10 = smov 64   ;;  %s192_s9 = int_to_ptr.hbm [resolvable:$true] %s191_s9 }
   0xe   : > { %p1298_p9 = pneg %p1732_p8  ;;  %s1653_s11 = smov 4  }
   0xf   : > { %s1654_s12 = smov [#allocation7]   ;;  %s1745_s14 = sadd.s32 1, %s1649_s21  }
  0x10   : > { %p1299_p10 = pnand %p1298_p9, %p43_p1  ;;  %s193_s13 = sshll.u32 %s1654_s12, 4  ;;  %s194_s13 = int_to_ptr.vmem [resolvable:$true] %s193_s13 }
  0x11   : > { %s29_s15 = sadd.s32 1, %s1645_s20  ;;  %s26_s16 = ssub.s32 %s1649_s21, %s1745_s14 }
  0x12   : > { %1301 = dma.hbm_to_vmem [thread:$0]  (!%p1299_p10), %s175_s28, 1024, %s177_s6, [#allocation6], %s1652_s10, %s1652_s10, %s1653_s11  }
  0x13   : > { %1304 = dma.hbm_to_vmem [thread:$0]  (!%p1299_p10), %s192_s9, 1024, %s194_s13, [#allocation6], %s1652_s10, %s1652_s10, %s1653_s11  }
  0x14   : > { %p36_p12 = scmp.ne.s32.totalorder %s1645_s20, %s1641_s19  ;;  %p27_p13 = scmp.eq.s32.totalorder %s26_s16, 0 }
  0x15   : > { %p37_p0 = scmp.eq.s32.totalorder %s1649_s21, 0  ;;  %p1315_p5 = scmp.lt.s32.totalorder %s1649_s21, 2 }
  0x16   : > { %p1755_p3 = por %p150_p2, %p36_p12  ;;  %s210_s26 = sand.u32 1, %s1645_s20  }
  0x17   : > { %s1761_s23 = scalar_select %p27_p13, %s1645_s20, %s29_s15  }
  0x18   : > { %p38_p7 = por %p37_p0, %p36_p12  ;;  %s1174_s27 = sshll.u32 %s210_s26, 7 }
  0x19   : > { %s1252_s28 = sshll.u32 %s1649_s21, 7  ;;  %s214_s8 = scalar_lea.vmem [#allocation2], %s1174_s27 }
  0x1a   : > { %s219_s7 = scalar_lea.hbm %s2346_s0, %s1252_s28  ;;  %s222_s9 = sshll.u32 %s214_s8, 4  ;;  %s223_s9 = int_to_ptr.vmem [resolvable:$true] %s222_s9 }
  0x1b   : > { %s220_s10 = sshll.u32 %s219_s7, 4  ;;  %p1768_p2 = pnand %p1315_p5, %p38_p7  ;;  %s221_s10 = int_to_ptr.hbm [resolvable:$true] %s220_s10 }
  0x1c   : > { %s211_s12 = scalar_lea.sflag [#allocation3], %s210_s26  ;;  %s1549_s13 = sshra.s32 %s221_s10, 4  ;;  %s1550_s13 = int_to_ptr.hbm [resolvable:$true] %s1549_s13 }
  0x1d   : > { %s1551_s15 = scalar_lea.hbm %s1550_s13, 128  ;;  %p1553_p10 = pneg %p1768_p2 }
  0x1e   : > { %p1552_p9 = scmp.ne.s32.totalorder %s1550_s13, %s1551_s15  ;;  %s1556_s28 = scalar_lea.hbm %s2346_s0, 256 }
  0x1f   : > { %p1557_p0 = scmp.lt.s32.totalorder %s1550_s13, %s2346_s0  ;;  %p1558_p5 = scmp.lt.s32.totalorder %s1556_s28, %s1551_s15 }
  0x20   : > { %p1554_p12 = pnand %p1553_p10, %p1552_p9 }
  0x21   : > { %p1559_p7 = por %p1558_p5, %p1557_p0 }
  0x22   : > { %p1555_p13 = pneg %p1554_p12 }
  0x24   : > { %p1560_p11 = pnand %p1559_p7, %p1555_p13 }
  0x26   : > { %1563 = shalt.err (!%p1560_p11)
}
  0x27   : > { %s1655_s26 = smov 128   ;;  %s1656_s7 = smov 8  }
  0x28   : > { %1308 = dma.hbm_to_vmem [thread:$0]  (!%p1768_p2), %s221_s10, 2048, %s223_s9, %s211_s12, %s1655_s26, %s1655_s26, %s1656_s7  }
  0x29   : > { %234 = sbr.rel (%p1732_p8) target bundleno = 1010 (0x3f2), region = 40  ;;  %s1785_s8 = sand.u32 (!%p1732_p8), 1, %s1641_s19  }
  0x2a   : > { %s1178_s13 = sshll.u32 (!%p1732_p8), %s1785_s8, 7  ;;  %s237_s15 = scalar_lea.sflag (!%p1732_p8), [#allocation3], %s1785_s8 }
  0x2b   : > { %s1791_s16 = scalar_lea.vmem (!%p1732_p8), [#allocation2], %s1178_s13 }
  0x2e   : > { %1624 = dma.done.wait (%p1719_p4), %s237_s15, 2048  }
  0x2f   : > { %1626 = vsyncadd (%p1719_p4), %s237_s15, 4294965248 }
  0x30   : > { %1628 = dma.done.wait (%p43_p1), [#allocation6], 2048  }
  0x31   : > { %1630 = vsyncadd (%p43_p1), [#allocation6], 4294965248  ;;  %v1260_v0 = vld [vmem:[#allocation5 + $0x38] sm:$0xff]  ;;  %v1259_v1 = vld [vmem:[#allocation5 + $0x30] sm:$0xff]  ;;  %s1214_s9 = sshll.u32 %s1710_s22, 7  ;;  %s2276_s12 = scalar_lea.vmem [#allocation8], %s1178_s13 }
  0x32   : > { %372 = vmatpush.bf16.msra.mxu0 %v1260_v0  ;;  %1270 = vmatpush.bf16.msra.mxu2 %v1260_v0  ;;  %v1258_v2 = vld [vmem:[#allocation5 + $0x28] sm:$0xff]  ;;  %v1257_v3 = vld [vmem:[#allocation5 + $0x20] sm:$0xff]  ;;  %v1256_v4 = vld [vmem:[#allocation5 + $0x18] sm:$0xff]  ;;  %s1073_s30 = scalar_lea.hbm %s2351_s5, %s1214_s9  ;;  %s1074_s26 = sshll.u32 %s2276_s12, 4  ;;  %s1075_s26 = int_to_ptr.vmem [resolvable:$true] %s1074_s26 }
  0x33   : > { %v1255_v5 = vld [vmem:[#allocation5 + $0x10] sm:$0xff]  ;;  %v1254_v6 = vld [vmem:[#allocation5 + $0x8] sm:$0xff]  ;;  %v1253_v7 = vld [vmem:[#allocation5] sm:$0xff]  ;;  %s1076_s6 = sshll.u32 %s1073_s30, 4  ;;  %s1062_s22 = scalar_lea.sflag [#allocation4], %s1785_s8  ;;  %s1077_s6 = int_to_ptr.hbm [resolvable:$true] %s1076_s6 }
  0x34   : > { %v1802_v8 = vld [vmem:[%s1791_s16] sm:$0xff]  ;;  %v1805_v9 = vld [vmem:[%s1791_s16 + $0x8] sm:$0xff]  ;;  %v1818_v14 = vld [vmem:[%s1791_s16 + $0x10] sm:$0xff]  ;;  %s1593_s7 = sshra.s32 %s1077_s6, 4  ;;  %s1599_s24 = scalar_lea.hbm %s2351_s5, 256  ;;  %s1594_s7 = int_to_ptr.hbm [resolvable:$true] %s1593_s7 }
  0x35   : > { %v1808_v10 = vld [vmem:[%s1791_s16 + $0x40] sm:$0xff]  ;;  %v1811_v11 = vld [vmem:[%s1791_s16 + $0x48] sm:$0xff]  ;;  %v296_v12 = vpack.c.bf16 %v1805_v9, %v1802_v8  ;;  %v1821_v15 = vld [vmem:[%s1791_s16 + $0x18] sm:$0xff]  ;;  %s1595_s13 = scalar_lea.hbm %s1594_s7, 128  ;;  %p1600_p11 = scmp.lt.s32.totalorder %s1594_s7, %s2351_s5 }
  0x36   : > { %373 = vmatpush.bf16.msra.mxu0 %v1259_v1  ;;  %1271 = vmatpush.bf16.msra.mxu2 %v1259_v1  ;;  %v300_v13 = vpack.c.bf16 %v1811_v11, %v1808_v10  ;;  %v1824_v16 = vld [vmem:[%s1791_s16 + $0x50] sm:$0xff]  ;;  %v1827_v17 = vld [vmem:[%s1791_s16 + $0x58] sm:$0xff]  ;;  %v297_v18 = vpack.c.bf16 %v1821_v15, %v1818_v14  ;;  %v1834_v20 = vld [vmem:[%s1791_s16 + $0x20] sm:$0xff]  ;;  %p1596_p1 = scmp.ne.s32.totalorder %s1594_s7, %s1595_s13  ;;  %p1601_p2 = scmp.lt.s32.totalorder %s1599_s24, %s1595_s13 }
  0x37   : > { %v301_v19 = vpack.c.bf16 %v1827_v17, %v1824_v16  ;;  %v1837_v21 = vld [vmem:[%s1791_s16 + $0x28] sm:$0xff]  ;;  %v1840_v22 = vld [vmem:[%s1791_s16 + $0x60] sm:$0xff]  ;;  %v1850_v26 = vld [vmem:[%s1791_s16 + $0x70] sm:$0xff] }
  0x38   : > { %v1843_v23 = vld [vmem:[%s1791_s16 + $0x68] sm:$0xff]  ;;  %v298_v24 = vpack.c.bf16 %v1837_v21, %v1834_v20  ;;  %v1853_v27 = vld [vmem:[%s1791_s16 + $0x78] sm:$0xff]  ;;  %v1856_v28 = vld [vmem:[%s1791_s16 + $0x30] sm:$0xff]  ;;  %p1597_p4 = pnand %p1596_p1, %p1755_p3  ;;  %p1602_p9 = por %p1601_p2, %p1600_p11 }
  0x39   : > { %v302_v25 = vpack.c.bf16 %v1843_v23, %v1840_v22  ;;  %v1859_v29 = vld [vmem:[%s1791_s16 + $0x38] sm:$0xff]  ;;  %v303_v30 = vpack.c.bf16 %v1853_v27, %v1850_v26  ;;  %v1868_v32 = vld [vmem:[%s2348_s2] ss:$0 sm:$0xff] }
  0x3a   : > { %374 = vmatpush.bf16.msra.mxu0 %v1258_v2  ;;  %1272 = vmatpush.bf16.msra.mxu2 %v1258_v2  ;;  %v299_v31 = vpack.c.bf16 %v1859_v29, %v1856_v28  ;;  %p1598_p8 = pneg %p1597_p4 }
  0x3c   : > { %p1603_p10 = pnand %p1602_p9, %p1598_p8 }
  0x3e   : > { %375 = vmatpush.bf16.msra.mxu0 %v1257_v3  ;;  %1273 = vmatpush.bf16.msra.mxu2 %v1257_v3 }
  0x42   : > { %376 = vmatpush.bf16.msra.mxu0 %v1256_v4  ;;  %1274 = vmatpush.bf16.msra.mxu2 %v1256_v4 }
  0x46   : > { %377 = vmatpush.bf16.msra.mxu0 %v1255_v5  ;;  %1275 = vmatpush.bf16.msra.mxu2 %v1255_v5 }
  0x4a   : > { %378 = vmatpush.bf16.msra.mxu0 %v1254_v6  ;;  %1276 = vmatpush.bf16.msra.mxu2 %v1254_v6 }
  0x4e   : > { %379 = vmatpush.bf16.msra.mxu0 %v1253_v7  ;;  %1277 = vmatpush.bf16.msra.mxu2 %v1253_v7 }
  0x51   : > { %380 = vmatmul.bf16.vlgmr.msra.gmra.mxu0 %v296_v12  ;;  %400 = vmatmul.bf16.vlgmr.msra.gmra.mxu2 %v300_v13 }
  0x61   : > { %385 = vmatmul.bf16.gmra.mxu0 %v297_v18  ;;  %405 = vmatmul.bf16.gmra.mxu2 %v301_v19 }
  0x71   : > { %390 = vmatmul.bf16.gmra.mxu0 %v298_v24  ;;  %410 = vmatmul.bf16.gmra.mxu2 %v302_v25 }
  0x81   : > { %415 = vmatmul.bf16.gmra.mxu2 %v303_v30  ;;  %395 = vmatmul.bf16.gmra.mxu0 %v299_v31 }
  0xce   : > { %v381_v33 = vpop.f32.mrf.mxu0 }
  0xcf   : > { %v1871_v34 = vadd.f32 %v1868_v32, %v381_v33 }
  0xd1   : > { %421 = vmax.xlane.f32.xlu1 %v1871_v34 }
  0xd4   : > { %v401_v35 = vpop.f32.mrf.mxu2 }
  0xd5   : > { %v402_v36 = vadd.f32 %v1868_v32, %v401_v35 }
  0xd6   : > { %v383_v37 = vpop.f32.mrf.mxu0 }
  0xd7   : > { %v384_v38 = vadd.f32 %v1868_v32, %v383_v37  ;;  %437 = vmax.xlane.f32.xlu0 %v402_v36 }
  0xd9   : > { %423 = vmax.xlane.f32.xlu1 %v384_v38 }
  0xdc   : > { %v403_v39 = vpop.f32.mrf.mxu2 }
  0xdd   : > { %v404_v40 = vadd.f32 %v1868_v32, %v403_v39 }
  0xde   : > { %v386_v41 = vpop.f32.mrf.mxu0 }
  0xdf   : > { %439 = vmax.xlane.f32.xlu0 %v404_v40  ;;  %v387_v42 = vadd.f32 %v1868_v32, %v386_v41 }
  0xe4   : > { %v406_v43 = vpop.f32.mrf.mxu2 }
  0xe5   : > { %v407_v44 = vadd.f32 %v1868_v32, %v406_v43 }
  0xe6   : > { %v388_v45 = vpop.f32.mrf.mxu0 }
  0xe7   : > { %v1880_v46 = vadd.f32 %v1868_v32, %v388_v45  ;;  %441 = vmax.xlane.f32.xlu2 %v407_v44  ;;  %425 = vmax.xlane.f32.xlu0 %v387_v42 }
  0xe9   : > { %427 = vmax.xlane.f32.xlu1 %v1880_v46 }
  0xec   : > { %v408_v47 = vpop.f32.mrf.mxu2 }
  0xed   : > { %v1884_v48 = vadd.f32 %v1868_v32, %v408_v47 }
  0xee   : > { %v391_v49 = vpop.f32.mrf.mxu0 }
  0xef   : > { %v1887_v50 = vadd.f32 %v1868_v32, %v391_v49  ;;  %443 = vmax.xlane.f32.xlu2 %v1884_v48 }
  0xf1   : > { %429 = vmax.xlane.f32.xlu1 %v1887_v50 }
  0xf4   : > { %v411_v51 = vpop.f32.mrf.mxu2 }
  0xf5   : > { %v1892_v52 = vadd.f32 %v1868_v32, %v411_v51 }
  0xf6   : > { %v393_v53 = vpop.f32.mrf.mxu0 }
  0xf7   : > { %445 = vmax.xlane.f32.xlu2 %v1892_v52  ;;  %v1896_v54 = vadd.f32 %v1868_v32, %v393_v53 }
  0xfc   : > { %v413_v55 = vpop.f32.mrf.mxu2 }
  0xfd   : > { %v1899_v56 = vadd.f32 %v1868_v32, %v413_v55 }
  0xfe   : > { %v396_v61 = vpop.f32.mrf.mxu0 }
  0xff   : > { %431 = vmax.xlane.f32.xlu2 %v1896_v54  ;;  %447 = vmax.xlane.f32.xlu0 %v1899_v56  ;;  %v1912_v62 = vadd.f32 %v1868_v32, %v396_v61 }
 0x104   : > { %v416_v57 = vpop.f32.mrf.mxu2 }
 0x105   : > { %v1904_v58 = vadd.f32 %v1868_v32, %v416_v57 }
 0x106   : > { %v398_v24 = vpop.f32.mrf.mxu0 }
 0x107   : > { %449 = vmax.xlane.f32.xlu0 %v1904_v58 }
 0x10c   : > { %v418_v59 = vpop.f32.mrf.mxu2 }
 0x10d   : > { %v1908_v60 = vadd.f32 %v1868_v32, %v418_v59 }
 0x10f   : > { %451 = vmax.xlane.f32.xlu1 %v1908_v60 }
 0x117   : > { %433 = vmax.xlane.f32.xlu1 %v1912_v62 }
 0x144   : > { %v422_v63 = vpop.xlane.xlu1 %421 }
 0x145   : > { %v453_v18 = vsub.f32 %v1871_v34, %v422_v63 }
 0x147   : > { %v469_v25 = vmul.f32 1.442695, %v453_v18 }
 0x14a   : > { %v438_v0 = vpop.xlane.xlu0 %437 }
 0x14b   : > { %v461_v1 = vsub.f32 %v402_v36, %v438_v0  ;;  %v1923_v36 = vadd.f32 %v1868_v32, %v398_v24 }
 0x14c   : > { %v424_v2 = vpop.xlane.xlu1 %423 }
 0x14d   : > { %v485_v3 = vmul.f32 1.442695, %v461_v1  ;;  %v454_v4 = vsub.f32 %v384_v38, %v424_v2 }
 0x14f   : > { %1361 = vpow2.f32 %v485_v3  ;;  %v471_v5 = vmul.f32 1.442695, %v454_v4  ;;  %v1268_v4 = vld [vmem:[#allocation7 + $0x38] sm:$0xff] }
 0x150   : > { %1278 = vmatpush.bf16.msra.mxu3 %v1268_v4  ;;  %852 = vmatpush.bf16.msra.mxu1 %v1268_v4 }
 0x151   : > { %1363 = vpow2.f32 %v471_v5  ;;  %v1267_v5 = vld [vmem:[#allocation7 + $0x30] sm:$0xff] }
 0x152   : > { %v440_v6 = vpop.xlane.xlu0 %439 }
 0x153   : > { %v462_v7 = vsub.f32 %v404_v40, %v440_v6 }
 0x154   : > { %1279 = vmatpush.bf16.msra.mxu3 %v1267_v5  ;;  %853 = vmatpush.bf16.msra.mxu1 %v1267_v5 }
 0x155   : > { %v1915_v12 = vpop.eup %1361  ;;  %v487_v13 = vmul.f32 1.442695, %v462_v7 }
 0x156   : > { %517 = vadd.xlane.f32.xlu2 %v1915_v12 }
 0x157   : > { %v1919_v19 = vpop.eup %1363  ;;  %1365 = vpow2.f32 %v487_v13 }
 0x158   : > { %503 = vadd.xlane.f32.xlu1 %v1919_v19  ;;  %1367 = vpow2.f32 %v469_v25 }
 0x15a   : > { %v442_v30 = vpop.xlane.xlu2 %441  ;;  %v426_v31 = vpop.xlane.xlu0 %425 }
 0x15b   : > { %v463_v33 = vsub.f32 %v407_v44, %v442_v30  ;;  %v455_v35 = vsub.f32 %v387_v42, %v426_v31 }
 0x15c   : > { %v428_v37 = vpop.xlane.xlu1 %427 }
 0x15d   : > { %v1925_v38 = vpop.eup %1365  ;;  %v489_v34 = vmul.f32 1.442695, %v463_v33  ;;  %v473_v39 = vmul.f32 1.442695, %v455_v35  ;;  %v456_v40 = vsub.f32 %v1880_v46, %v428_v37 }
 0x15e   : > { %435 = vmax.xlane.f32.xlu2 %v1923_v36  ;;  %519 = vadd.xlane.f32.xlu0 %v1925_v38  ;;  %v1931_v32 = vpop.eup %1367 }
 0x15f   : > { %1369 = vpow2.f32 %v489_v34  ;;  %v475_v41 = vmul.f32 1.442695, %v456_v40  ;;  %v1265_v34 = vld [vmem:[#allocation7 + $0x20] sm:$0xff]  ;;  %v566_v40 = vlaneseq }
 0x160   : > { %1371 = vpow2.f32 %v473_v39  ;;  %v1264_v39 = vld [vmem:[#allocation7 + $0x18] sm:$0xff] }
 0x161   : > { %1373 = vpow2.f32 %v475_v41  ;;  %v1262_v41 = vld [vmem:[#allocation7 + $0x8] sm:$0xff] }
 0x162   : > { %v444_v43 = vpop.xlane.xlu2 %443 }
 0x163   : > { %v464_v42 = vsub.f32 %v1884_v48, %v444_v43  ;;  %v1974_v43 = vshrl.u32 %v566_v40, 7 }
 0x164   : > { %v430_v44 = vpop.xlane.xlu1 %429 }
 0x165   : > { %v1933_v45 = vpop.eup %1369  ;;  %v491_v47 = vmul.f32 1.442695, %v464_v42  ;;  %v457_v46 = vsub.f32 %v1887_v50, %v430_v44  ;;  %v1261_v42 = vld [vmem:[#allocation7] sm:$0xff]  ;;  %v575_v44 = vadd.s32 64, %v1974_v43 }
 0x166   : > { %v1935_v49 = vpop.eup %1371  ;;  %521 = vadd.xlane.f32.xlu2 %v1933_v45  ;;  %501 = vadd.xlane.f32.xlu0 %v1931_v32 }
 0x167   : > { %1375 = vpow2.f32 %v491_v47  ;;  %505 = vadd.xlane.f32.xlu1 %v1935_v49  ;;  %v477_v51 = vmul.f32 1.442695, %v457_v46  ;;  %v1942_v55 = vpop.eup %1373  ;;  %v576_v47 = vadd.s32 72, %v1974_v43  ;;  %v1981_v46 = vstv %s1214_s9 }
 0x168   : > { %v1993_v4 = vadd.s32 %v1981_v46, %v1974_v43 }
 0x169   : > { %1377 = vpow2.f32 %v477_v51  ;;  %v592_v51 = vadd.s32 %v1981_v46, %v575_v44 }
 0x16a   : > { %v446_v48 = vpop.xlane.xlu2 %445  ;;  %vm600_vm3 = vcmp.lt.s32.totalorder %v1993_v4, 0 }
 0x16b   : > { %v465_v53 = vsub.f32 %v1892_v52, %v446_v48  ;;  %v593_v48 = vadd.s32 %v1981_v46, %v576_v47  ;;  %vm656_vm0 = vcmp.lt.s32.totalorder %v592_v51, 0 }
 0x16d   : > { %v1944_v57 = vpop.eup %1375  ;;  %v493_v59 = vmul.f32 1.442695, %v465_v53  ;;  %v657_v53 = vsub.s32 0, %v592_v51  ;;  %vm663_vm1 = vcmp.lt.s32.totalorder %v593_v48, 0 }
 0x16e   : > { %523 = vadd.xlane.f32.xlu0 %v1944_v57  ;;  %507 = vadd.xlane.f32.xlu2 %v1942_v55 }
 0x16f   : > { %1379 = vpow2.f32 %v493_v59  ;;  %v1950_v1 = vpop.eup %1377 }
 0x172   : > { %v432_v50 = vpop.xlane.xlu2 %431  ;;  %v448_v61 = vpop.xlane.xlu0 %447 }
 0x173   : > { %v458_v63 = vsub.f32 %v1896_v54, %v432_v50  ;;  %v466_v0 = vsub.f32 %v1899_v56, %v448_v61  ;;  %v664_v50 = vsub.s32 0, %v593_v48  ;;  %v568_v61 = vadd.s32 8, %v1974_v43 }
 0x175   : > { %v1952_v52 = vpop.eup %1379  ;;  %v479_v2 = vmul.f32 1.442695, %v458_v63  ;;  %v495_v3 = vmul.f32 1.442695, %v466_v0  ;;  %v658_v63 = vsel %vm656_vm0, %v657_v53, %v592_v51  ;;  %v665_v0 = vsel %vm663_vm1, %v664_v50, %v593_v48 }
 0x176   : > { %525 = vadd.xlane.f32.xlu0 %v1952_v52  ;;  %509 = vadd.xlane.f32.xlu2 %v1950_v1  ;;  %v570_v53 = vadd.s32 24, %v1974_v43 }
 0x177   : > { %1381 = vpow2.f32 %v479_v2  ;;  %v1989_v2 = vadd.s32 %v1981_v46, %v568_v61 }
 0x178   : > { %1383 = vpow2.f32 %v495_v3  ;;  %v660_v3 = vand.u32 31, %v658_v63 }
 0x179   : > { %vm607_vm2 = vcmp.lt.s32.totalorder %v1989_v2, 0 }
 0x17a   : > { %v450_v6 = vpop.xlane.xlu0 %449 }
 0x17b   : > { %v467_v54 = vsub.f32 %v1904_v58, %v450_v6 }
 0x17d   : > { %v1957_v56 = vpop.eup %1381  ;;  %v497_v7 = vmul.f32 1.442695, %v467_v54  ;;  %v667_v54 = vand.u32 31, %v665_v0 }
 0x17e   : > { %v1959_v13 = vpop.eup %1383  ;;  %511 = vadd.xlane.f32.xlu0 %v1957_v56 }
 0x17f   : > { %1385 = vpow2.f32 %v497_v7  ;;  %527 = vadd.xlane.f32.xlu1 %v1959_v13  ;;  %v577_v7 = vadd.s32 80, %v1974_v43  ;;  %v668_v40 = vsub.s32 0, %v667_v54 }
 0x181   : > { %v669_v61 = vsel %vm663_vm1, %v668_v40, %v667_v54 }
 0x182   : > { %v452_v18 = vpop.xlane.xlu1 %451  ;;  %vm721_vm8 = vcmp.ge.s32.totalorder %v669_v61, 16 }
 0x183   : > { %v468_v24 = vsub.f32 %v1908_v60, %v452_v18  ;;  %v1266_v60 = vld [vmem:[#allocation7 + $0x28] sm:$0xff] }
 0x184   : > { %1280 = vmatpush.bf16.msra.mxu3 %v1266_v60  ;;  %854 = vmatpush.bf16.msra.mxu1 %v1266_v60 }
 0x185   : > { %v1964_v25 = vpop.eup %1385  ;;  %v499_v30 = vmul.f32 1.442695, %v468_v24 }
 0x187   : > { %1387 = vpow2.f32 %v499_v30  ;;  %529 = vadd.xlane.f32.xlu1 %v1964_v25  ;;  %v608_v30 = vsub.s32 0, %v1989_v2 }
 0x188   : > { %1281 = vmatpush.bf16.msra.mxu3 %v1265_v34  ;;  %855 = vmatpush.bf16.msra.mxu1 %v1265_v34  ;;  %v661_v34 = vsub.s32 0, %v660_v3 }
 0x18a   : > { %v434_v58 = vpop.xlane.xlu1 %433  ;;  %v662_v50 = vsel %vm656_vm0, %v661_v34, %v660_v3 }
 0x18b   : > { %v459_v31 = vsub.f32 %v1912_v62, %v434_v58  ;;  %v1263_v62 = vld [vmem:[#allocation7 + $0x10] sm:$0xff]  ;;  %v578_v58 = vadd.s32 88, %v1974_v43  ;;  %vm720_vm7 = vcmp.ge.s32.totalorder %v662_v50, 16 }
 0x18c   : > { %1282 = vmatpush.bf16.msra.mxu3 %v1264_v39  ;;  %856 = vmatpush.bf16.msra.mxu1 %v1264_v39  ;;  %v601_v39 = vsub.s32 0, %v1993_v4 }
 0x18d   : > { %v1968_v33 = vpop.eup %1387  ;;  %v481_v35 = vmul.f32 1.442695, %v459_v31  ;;  %v569_v31 = vadd.s32 16, %v1974_v43 }
 0x18e   : > { %531 = vadd.xlane.f32.xlu2 %v1968_v33  ;;  %v602_v47 = vsel %vm600_vm3, %v601_v39, %v1993_v4 }
 0x18f   : > { %1389 = vpow2.f32 %v481_v35 }
 0x190   : > { %1283 = vmatpush.bf16.msra.mxu3 %v1263_v62  ;;  %857 = vmatpush.bf16.msra.mxu1 %v1263_v62 }
 0x194   : > { %1284 = vmatpush.bf16.msra.mxu3 %v1262_v41  ;;  %858 = vmatpush.bf16.msra.mxu1 %v1262_v41  ;;  %v2005_v41 = vadd.s32 %v1981_v46, %v577_v7 }
 0x195   : > { %v1971_v37 = vpop.eup %1389 }
 0x196   : > { %513 = vadd.xlane.f32.xlu0 %v1971_v37  ;;  %v671_v0 = vsub.s32 0, %v2005_v41  ;;  %vm670_vm4 = vcmp.lt.s32.totalorder %v2005_v41, 0 }
 0x198   : > { %1285 = vmatpush.bf16.msra.mxu3 %v1261_v42  ;;  %859 = vmatpush.bf16.msra.mxu1 %v1261_v42  ;;  %v2011_v42 = vadd.s32 %v1981_v46, %v578_v58  ;;  %v604_v58 = vand.u32 31, %v602_v47 }
 0x19a   : > { %vm677_vm5 = vcmp.lt.s32.totalorder %v2011_v42, 0 }
 0x1c9   : > { %v518_v59 = vpop.xlane.xlu2 %517 }
 0x1ca   : > { %1391 = vrcp.f32 %v518_v59 }
 0x1cb   : > { %v504_v6 = vpop.xlane.xlu1 %503 }
 0x1d0   : > { %v1392_v5 = vpop.eup %1391 }
 0x1d1   : > { %v436_v18 = vpop.xlane.xlu2 %435  ;;  %v520_v24 = vpop.xlane.xlu0 %519  ;;  %v557_v60 = vmul.f32 %v1392_v5, %v1915_v12  ;;  %v2014_v12 = vadd.s32 %v1981_v46, %v569_v31  ;;  %v672_v31 = vsel %vm670_vm4, %v671_v0, %v2005_v41  ;;  %v572_v41 = vadd.s32 40, %v1974_v43 }
 0x1d2   : > { %v460_v35 = vsub.f32 %v1923_v36, %v436_v18  ;;  %1393 = vrcp.f32 %v520_v24  ;;  %v609_v36 = vsel %vm607_vm2, %v608_v30, %v1989_v2  ;;  %v678_v24 = vsub.s32 0, %v2011_v42 }
 0x1d3   : > { %1395 = vrcp.f32 %v504_v6  ;;  %v736_v44 = vmul.f32 20.0, %v557_v60  ;;  %v611_v63 = vand.u32 31, %v609_v36  ;;  %v615_v30 = vsub.s32 0, %v2014_v12 }
 0x1d4   : > { %v483_v62 = vmul.f32 1.442695, %v460_v35  ;;  %vm614_vm6 = vcmp.lt.s32.totalorder %v2014_v12, 0  ;;  %v679_v34 = vsel %vm677_vm5, %v678_v24, %v2011_v42 }
 0x1d5   : > { %v752_v48 = vadd.f32 %v736_v44, %v1808_v10  ;;  %v612_v60 = vsub.s32 0, %v611_v63  ;;  %v674_v44 = vand.u32 31, %v672_v31  ;;  %v681_v61 = vand.u32 31, %v679_v34 }
 0x1d6   : > { %1397 = vpow2.f32 %v483_v62  ;;  %v605_v62 = vsub.s32 0, %v604_v58 }
 0x1d7   : > { %v768_v40 = vsel %vm720_vm7, %v752_v48, %v1808_v10  ;;  %v675_v48 = vsub.s32 0, %v674_v44  ;;  %v682_v31 = vsub.s32 0, %v681_v61 }
 0x1d8   : > { %v1394_v59 = vpop.eup %1393  ;;  %v606_v24 = vsel %vm600_vm3, %v605_v62, %v604_v58 }
 0x1d9   : > { %v1396_v5 = vpop.eup %1395  ;;  %v558_v6 = vmul.f32 %v1394_v59, %v1925_v38  ;;  %v522_v7 = vpop.xlane.xlu2 %521  ;;  %v2031_v38 = vadd.s32 %v1981_v46, %v570_v53  ;;  %vm712_vm10 = vcmp.ge.s32.totalorder %v606_v24, 16  ;;  %v676_v34 = vsel %vm670_vm4, %v675_v48, %v674_v44 }
 0x1da   : > { %v502_v18 = vpop.xlane.xlu0 %501  ;;  %1399 = vrcp.f32 %v522_v7  ;;  %v550_v54 = vmul.f32 %v1396_v5, %v1919_v19  ;;  %v506_v39 = vpop.xlane.xlu1 %505  ;;  %v2047_v19 = vsel %vm614_vm6, %v615_v30, %v2014_v12  ;;  %v613_v7 = vsel %vm607_vm2, %v612_v60, %v611_v63 }
 0x1db   : > { %v737_v51 = vmul.f32 20.0, %v558_v6  ;;  %1401 = vrcp.f32 %v502_v18  ;;  %v622_v47 = vsub.s32 0, %v2031_v38  ;;  %vm621_vm9 = vcmp.lt.s32.totalorder %v2031_v38, 0 }
 0x1dc   : > { %v2033_v3 = vpop.eup %1397  ;;  %v729_v59 = vmul.f32 20.0, %v550_v54  ;;  %1403 = vrcp.f32 %v506_v39  ;;  %v618_v10 = vand.u32 31, %v2047_v19  ;;  %v580_v30 = vadd.s32 104, %v1974_v43 }
 0x1dd   : > { %515 = vadd.xlane.f32.xlu1 %v2033_v3  ;;  %v753_v35 = vadd.f32 %v737_v51, %v1811_v11  ;;  %v623_v2 = vsel %vm621_vm9, %v622_v47, %v2031_v38  ;;  %vm713_vm11 = vcmp.ge.s32.totalorder %v613_v7, 16  ;;  %v571_v47 = vadd.s32 32, %v1974_v43 }
 0x1de   : > { %v745_v54 = vadd.f32 %v729_v59, %v1805_v9  ;;  %v625_v58 = vand.u32 31, %v623_v2  ;;  %v619_v39 = vsub.s32 0, %v618_v10  ;;  %vm722_vm14 = vcmp.ge.s32.totalorder %v676_v34, 16 }
 0x1df   : > { %v769_v36 = vsel %vm721_vm8, %v753_v35, %v1811_v11  ;;  %v579_v11 = vadd.s32 96, %v1974_v43  ;;  %v581_v38 = vadd.s32 112, %v1974_v43 }
 0x1e0   : > { %v1400_v53 = vpop.eup %1399  ;;  %v780_v50 = vpack.c.bf16 %v769_v36, %v768_v40  ;;  %v761_v40 = vsel %vm713_vm11, %v745_v54, %v1805_v9  ;;  %v683_v36 = vsel %vm677_vm5, %v682_v31, %v681_v61  ;;  %v2090_v61 = vadd.s32 %v1981_v46, %v571_v47 }
 0x1e1   : > { %v1402_v0 = vpop.eup %1401  ;;  %v508_v6 = vpop.xlane.xlu2 %507  ;;  %v559_v51 = vmul.f32 %v1400_v53, %v1933_v45  ;;  %v2071_v45 = vadd.s32 %v1981_v46, %v580_v30  ;;  %vm723_vm15 = vcmp.ge.s32.totalorder %v683_v36, 16  ;;  %v620_v48 = vsel %vm614_vm6, %v619_v39, %v618_v10 }
 0x1e2   : > { %v524_v5 = vpop.xlane.xlu0 %523  ;;  %v549_v18 = vmul.f32 %v1402_v0, %v1931_v32  ;;  %880 = vmatmul.bf16.vlgmr.msra.gmra.mxu3 %v780_v50  ;;  %v2067_v32 = vadd.s32 %v1981_v46, %v579_v11  ;;  %v1404_v35 = vpop.eup %1403  ;;  %v2097_v11 = vadd.s32 %v1981_v46, %v572_v41  ;;  %v582_v10 = vadd.s32 120, %v1974_v43 }
 0x1e3   : > { %1405 = vrcp.f32 %v524_v5  ;;  %v738_v60 = vmul.f32 20.0, %v559_v51  ;;  %vm691_vm13 = vcmp.lt.s32.totalorder %v2071_v45, 0  ;;  %vm628_vm2 = vcmp.lt.s32.totalorder %v2090_v61, 0 }
 0x1e4   : > { %1407 = vrcp.f32 %v508_v6  ;;  %v728_v63 = vmul.f32 20.0, %v549_v18  ;;  %v685_v5 = vsub.s32 0, %v2067_v32  ;;  %v626_v6 = vsub.s32 0, %v625_v58 }
 0x1e5   : > { %vm684_vm12 = vcmp.lt.s32.totalorder %v2067_v32, 0  ;;  %v754_v42 = vadd.f32 %v738_v60, %v1824_v16  ;;  %vm635_vm0 = vcmp.lt.s32.totalorder %v2097_v11, 0  ;;  %vm714_vm3 = vcmp.ge.s32.totalorder %v620_v48, 16 }
 0x1e6   : > { %v744_v4 = vadd.f32 %v728_v63, %v1802_v8  ;;  %v686_v7 = vsel %vm684_vm12, %v685_v5, %v2067_v32  ;;  %v627_v2 = vsel %vm621_vm9, %v626_v6, %v625_v58 }
 0x1e7   : > { %v770_v30 = vsel %vm722_vm14, %v754_v42, %v1824_v16  ;;  %v688_v31 = vand.u32 31, %v686_v7  ;;  %v636_v16 = vsub.s32 0, %v2097_v11  ;;  %vm715_vm1 = vcmp.ge.s32.totalorder %v627_v2, 16 }
 0x1e8   : > { %v760_v19 = vsel %vm712_vm10, %v744_v4, %v1802_v8  ;;  %v692_v8 = vsub.s32 0, %v2071_v45  ;;  %v629_v4 = vsub.s32 0, %v2090_v61 }
 0x1e9   : > { %v1406_v62 = vpop.eup %1405  ;;  %v776_v0 = vpack.c.bf16 %v761_v40, %v760_v19  ;;  %v510_v24 = vpop.xlane.xlu2 %509  ;;  %v637_v40 = vsel %vm635_vm0, %v636_v16, %v2097_v11 }
 0x1ea   : > { %v1408_v53 = vpop.eup %1407  ;;  %v560_v59 = vmul.f32 %v1406_v62, %v1944_v57  ;;  %v526_v50 = vpop.xlane.xlu0 %525  ;;  %v551_v57 = vmul.f32 %v1404_v35, %v1935_v49  ;;  %v693_v49 = vsel %vm691_vm13, %v692_v8, %v2071_v45  ;;  %v689_v62 = vsub.s32 0, %v688_v31 }
 0x1eb   : > { %v552_v44 = vmul.f32 %v1408_v53, %v1942_v55  ;;  %1409 = vrcp.f32 %v526_v50  ;;  %860 = vmatmul.bf16.vlgmr.msra.gmra.mxu1 %v776_v0  ;;  %v695_v34 = vand.u32 31, %v693_v49  ;;  %v630_v47 = vsel %vm628_vm2, %v629_v4, %v2090_v61 }
 0x1ec   : > { %v739_v9 = vmul.f32 20.0, %v560_v59  ;;  %v730_v63 = vmul.f32 20.0, %v551_v57  ;;  %1411 = vrcp.f32 %v510_v24  ;;  %v598_v53 = vadd.s32 %v1981_v46, %v581_v38 }
 0x1ed   : > { %v731_v18 = vmul.f32 20.0, %v552_v44  ;;  %v696_v19 = vsub.s32 0, %v695_v34  ;;  %v599_v59 = vadd.s32 %v1981_v46, %v582_v10  ;;  %v639_v41 = vand.u32 31, %v637_v40 }
 0x1ee   : > { %v755_v55 = vadd.f32 %v739_v9, %v1827_v17  ;;  %v746_v39 = vadd.f32 %v730_v63, %v1818_v14  ;;  %v690_v8 = vsel %vm684_vm12, %v689_v62, %v688_v31  ;;  %v632_v9 = vand.u32 31, %v630_v47 }
 0x1ef   : > { %v747_v12 = vadd.f32 %v731_v18, %v1821_v15  ;;  %v699_v7 = vsub.s32 0, %v598_v53  ;;  %v706_v18 = vsub.s32 0, %v599_v59  ;;  %vm698_vm4 = vcmp.lt.s32.totalorder %v598_v53, 0 }
 0x1f0   : > { %v771_v51 = vsel %vm723_vm15, %v755_v55, %v1827_v17  ;;  %v762_v5 = vsel %vm714_vm3, %v746_v39, %v1818_v14  ;;  %vm705_vm5 = vcmp.lt.s32.totalorder %v599_v59, 0  ;;  %v640_v49 = vsub.s32 0, %v639_v41 }
 0x1f1   : > { %v781_v54 = vpack.c.bf16 %v771_v51, %v770_v30  ;;  %v1410_v35 = vpop.eup %1409  ;;  %v763_v36 = vsel %vm715_vm1, %v747_v12, %v1821_v15  ;;  %v697_v15 = vsel %vm691_vm13, %v696_v19, %v695_v34  ;;  %vm724_vm6 = vcmp.ge.s32.totalorder %v690_v8, 16 }
 0x1f2   : > { %v512_v60 = vpop.xlane.xlu0 %511  ;;  %v528_v17 = vpop.xlane.xlu1 %527  ;;  %v561_v58 = vmul.f32 %v1410_v35, %v1952_v52  ;;  %v777_v6 = vpack.c.bf16 %v763_v36, %v762_v5  ;;  %vm725_vm7 = vcmp.ge.s32.totalorder %v697_v15, 16  ;;  %v633_v45 = vsub.s32 0, %v632_v9 }
 0x1f3   : > { %1413 = vrcp.f32 %v512_v60  ;;  %885 = vmatmul.bf16.gmra.mxu3 %v781_v54  ;;  %v1412_v52 = vpop.eup %1411  ;;  %v707_v51 = vsel %vm705_vm5, %v706_v18, %v599_v59 }
 0x1f4   : > { %1415 = vrcp.f32 %v528_v17  ;;  %v740_v0 = vmul.f32 20.0, %v561_v58  ;;  %v553_v14 = vmul.f32 %v1412_v52, %v1950_v1  ;;  %v641_v1 = vsel %vm635_vm0, %v640_v49, %v639_v41 }
 0x1f5   : > { %v709_v60 = vand.u32 31, %v707_v51  ;;  %v634_v34 = vsel %vm628_vm2, %v633_v45, %v632_v9  ;;  %vm717_vm8 = vcmp.ge.s32.totalorder %v641_v1, 16  ;;  %v2169_v45 = vld [vmem:[%s2350_s4] ss:$0 sm:$0xff] }
 0x1f6   : > { %v756_v32 = vadd.f32 %v740_v0, %v1840_v22  ;;  %v732_v48 = vmul.f32 20.0, %v553_v14  ;;  %vm716_vm9 = vcmp.ge.s32.totalorder %v634_v34, 16 }
 0x1f7   : > { %v710_v11 = vsub.s32 0, %v709_v60 }
 0x1f8   : > { %v772_v2 = vsel %vm724_vm6, %v756_v32, %v1840_v22  ;;  %v748_v22 = vadd.f32 %v732_v48, %v1834_v20 }
 0x1f9   : > { %v1414_v50 = vpop.eup %1413 }
 0x1fa   : > { %v1416_v44 = vpop.eup %1415  ;;  %v554_v42 = vmul.f32 %v1414_v50, %v1957_v56  ;;  %v530_v55 = vpop.xlane.xlu1 %529  ;;  %v764_v58 = vsel %vm716_vm9, %v748_v22, %v1834_v20 }
 0x1fb   : > { %v562_v57 = vmul.f32 %v1416_v44, %v1959_v13  ;;  %1417 = vrcp.f32 %v530_v55  ;;  %865 = vmatmul.bf16.gmra.mxu1 %v777_v6  ;;  %v700_v13 = vsel %vm698_vm4, %v699_v7, %v598_v53  ;;  %v574_v53 = vadd.s32 56, %v1974_v43 }
 0x1fc   : > { %v733_v30 = vmul.f32 20.0, %v554_v42  ;;  %v702_v35 = vand.u32 31, %v700_v13 }
 0x1fd   : > { %v741_v24 = vmul.f32 20.0, %v562_v57  ;;  %v591_v52 = vadd.s32 %v1981_v46, %v574_v53 }
 0x1fe   : > { %v749_v16 = vadd.f32 %v733_v30, %v1837_v21 }
 0x1ff   : > { %v757_v56 = vadd.f32 %v741_v24, %v1843_v23  ;;  %v650_v5 = vsub.s32 0, %v591_v52  ;;  %vm649_vm13 = vcmp.lt.s32.totalorder %v591_v52, 0 }
 0x200   : > { %v765_v12 = vsel %vm717_vm8, %v749_v16, %v1837_v21 }
 0x201   : > { %v773_v63 = vsel %vm725_vm7, %v757_v56, %v1843_v23  ;;  %v1418_v54 = vpop.eup %1417  ;;  %v532_v31 = vpop.xlane.xlu2 %531  ;;  %v703_v23 = vsub.s32 0, %v702_v35  ;;  %v778_v39 = vpack.c.bf16 %v765_v12, %v764_v58 }
 0x202   : > { %v782_v4 = vpack.c.bf16 %v773_v63, %v772_v2  ;;  %1419 = vrcp.f32 %v532_v31  ;;  %v563_v17 = vmul.f32 %v1418_v54, %v1964_v25  ;;  %v711_v25 = vsel %vm705_vm5, %v710_v11, %v709_v60 }
 0x203   : > { %v704_v62 = vsel %vm698_vm4, %v703_v23, %v702_v35  ;;  %vm727_vm11 = vcmp.ge.s32.totalorder %v711_v25, 16 }
 0x204   : > { %890 = vmatmul.bf16.gmra.mxu3 %v782_v4  ;;  %v742_v38 = vmul.f32 20.0, %v563_v17  ;;  %vm726_vm10 = vcmp.ge.s32.totalorder %v704_v62, 16 }
 0x206   : > { %v758_v40 = vadd.f32 %v742_v38, %v1850_v26 }
 0x208   : > { %v1420_v10 = vpop.eup %1419  ;;  %v774_v21 = vsel %vm726_vm10, %v758_v40, %v1850_v26  ;;  %v651_v26 = vsel %vm649_vm13, %v650_v5, %v591_v52 }
 0x209   : > { %v564_v61 = vmul.f32 %v1420_v10, %v1968_v33  ;;  %v573_v33 = vadd.s32 48, %v1974_v43  ;;  %v514_v50 = vpop.xlane.xlu0 %513  ;;  %v653_v8 = vand.u32 31, %v651_v26 }
 0x20a   : > { %1421 = vrcp.f32 %v514_v50 }
 0x20b   : > { %v743_v19 = vmul.f32 20.0, %v564_v61  ;;  %870 = vmatmul.bf16.gmra.mxu1 %v778_v39  ;;  %v590_v59 = vadd.s32 %v1981_v46, %v573_v33  ;;  %v654_v9 = vsub.s32 0, %v653_v8 }
 0x20d   : > { %v759_v36 = vadd.f32 %v743_v19, %v1853_v27  ;;  %v643_v0 = vsub.s32 0, %v590_v59  ;;  %vm642_vm12 = vcmp.lt.s32.totalorder %v590_v59, 0  ;;  %v655_v7 = vsel %vm649_vm13, %v654_v9, %v653_v8 }
 0x20e   : > { %vm719_vm15 = vcmp.ge.s32.totalorder %v655_v7, 16 }
 0x20f   : > { %v775_v47 = vsel %vm727_vm11, %v759_v36, %v1853_v27  ;;  %v644_v41 = vsel %vm642_vm12, %v643_v0, %v590_v59 }
 0x210   : > { %v783_v20 = vpack.c.bf16 %v775_v47, %v774_v21  ;;  %v1422_v44 = vpop.eup %1421  ;;  %v646_v6 = vand.u32 31, %v644_v41 }
 0x211   : > { %v555_v15 = vmul.f32 %v1422_v44, %v1971_v37 }
 0x212   : > { %v647_v43 = vsub.s32 0, %v646_v6 }
 0x213   : > { %v734_v42 = vmul.f32 20.0, %v555_v15 }
 0x214   : > { %895 = vmatmul.bf16.gmra.mxu3 %v783_v20  ;;  %v648_v55 = vsel %vm642_vm12, %v647_v43, %v646_v6 }
 0x215   : > { %v750_v14 = vadd.f32 %v734_v42, %v1856_v28  ;;  %vm718_vm14 = vcmp.ge.s32.totalorder %v648_v55, 16 }
 0x217   : > { %v766_v32 = vsel %vm718_vm14, %v750_v14, %v1856_v28 }
 0x250   : > { %v516_v27 = vpop.xlane.xlu1 %515 }
 0x251   : > { %1423 = vrcp.f32 %v516_v27 }
 0x257   : > { %v1424_v57 = vpop.eup %1423 }
 0x258   : > { %v556_v46 = vmul.f32 %v1424_v57, %v2033_v3 }
 0x25a   : > { %v735_v18 = vmul.f32 20.0, %v556_v46 }
 0x25c   : > { %v751_v24 = vadd.f32 %v735_v18, %v1859_v29 }
 0x25e   : > { %v767_v49 = vsel %vm719_vm15, %v751_v24, %v1859_v29 }
 0x25f   : > { %v779_v37 = vpack.c.bf16 %v767_v49, %v766_v32 }
 0x261   : > { %875 = vmatmul.bf16.gmra.mxu1 %v779_v37 }
 0x265   : > { %v881_v3 = vpop.f32.mrf.mxu3 }
 0x266   : > { %v882_v30 = vadd.f32 %v2169_v45, %v881_v3 }
 0x268   : > { %v861_v56 = vpop.f32.mrf.mxu1  ;;  %917 = vmax.xlane.f32.xlu1 %v882_v30 }
 0x269   : > { %v862_v13 = vadd.f32 %v2169_v45, %v861_v56 }
 0x26b   : > { %901 = vmax.xlane.f32.xlu2 %v862_v13 }
 0x26d   : > { %v883_v51 = vpop.f32.mrf.mxu3 }
 0x26e   : > { %v2174_v28 = vadd.f32 %v2169_v45, %v883_v51 }
 0x270   : > { %v863_v48 = vpop.f32.mrf.mxu1 }
 0x271   : > { %v864_v29 = vadd.f32 %v2169_v45, %v863_v48 }
 0x273   : > { %903 = vmax.xlane.f32.xlu0 %v864_v29  ;;  %919 = vmax.xlane.f32.xlu2 %v2174_v28 }
 0x276   : > { %v886_v2 = vpop.f32.mrf.mxu3 }
 0x277   : > { %v887_v1 = vadd.f32 %v2169_v45, %v886_v2 }
 0x278   : > { %v866_v63 = vpop.f32.mrf.mxu1 }
 0x279   : > { %v867_v54 = vadd.f32 %v2169_v45, %v866_v63 }
 0x27b   : > { %921 = vmax.xlane.f32.xlu0 %v887_v1  ;;  %905 = vmax.xlane.f32.xlu1 %v867_v54 }
 0x27e   : > { %v888_v31 = vpop.f32.mrf.mxu3 }
 0x27f   : > { %v889_v35 = vadd.f32 %v2169_v45, %v888_v31 }
 0x280   : > { %v868_v4 = vpop.f32.mrf.mxu1 }
 0x281   : > { %v2182_v60 = vadd.f32 %v2169_v45, %v868_v4 }
 0x283   : > { %907 = vmax.xlane.f32.xlu2 %v2182_v60  ;;  %923 = vmax.xlane.f32.xlu1 %v889_v35 }
 0x287   : > { %v891_v34 = vpop.f32.mrf.mxu3 }
 0x288   : > { %v871_v16 = vpop.f32.mrf.mxu1  ;;  %v2186_v17 = vadd.f32 %v2169_v45, %v891_v34 }
 0x289   : > { %v2189_v22 = vadd.f32 %v2169_v45, %v871_v16 }
 0x28b   : > { %909 = vmax.xlane.f32.xlu0 %v2189_v22  ;;  %925 = vmax.xlane.f32.xlu2 %v2186_v17 }
 0x28f   : > { %v893_v23 = vpop.f32.mrf.mxu3 }
 0x290   : > { %v873_v11 = vpop.f32.mrf.mxu1  ;;  %v2216_v27 = vadd.f32 %v2169_v45, %v893_v23 }
 0x291   : > { %v2194_v12 = vadd.f32 %v2169_v45, %v873_v11 }
 0x293   : > { %911 = vmax.xlane.f32.xlu1 %v2194_v12 }
 0x297   : > { %v896_v38 = vpop.f32.mrf.mxu3 }
 0x298   : > { %v2198_v10 = vadd.f32 %v2169_v45, %v896_v38 }
 0x29b   : > { %929 = vmax.xlane.f32.xlu1 %v2198_v10 }
 0x29f   : > { %v898_v19 = vpop.f32.mrf.mxu3 }
 0x2a0   : > { %v2206_v21 = vadd.f32 %v2169_v45, %v898_v19 }
 0x2db   : > { %v918_v61 = vpop.xlane.xlu1 %917 }
 0x2dc   : > { %v941_v62 = vsub.f32 %v882_v30, %v918_v61 }
 0x2de   : > { %v876_v58 = vpop.f32.mrf.mxu1  ;;  %v902_v25 = vpop.xlane.xlu2 %901  ;;  %v965_v40 = vmul.f32 1.442695, %v941_v62 }
 0x2df   : > { %v2202_v39 = vadd.f32 %v2169_v45, %v876_v58  ;;  %v933_v59 = vsub.f32 %v862_v13, %v902_v25 }
 0x2e0   : > { %1425 = vpow2.f32 %v965_v40 }
 0x2e1   : > { %913 = vmax.xlane.f32.xlu2 %v2202_v39  ;;  %v949_v50 = vmul.f32 1.442695, %v933_v59 }
 0x2e6   : > { %v904_v36 = vpop.xlane.xlu0 %903  ;;  %v878_v20 = vpop.f32.mrf.mxu1 }
 0x2e7   : > { %v934_v47 = vsub.f32 %v864_v29, %v904_v36  ;;  %v2209_v33 = vadd.f32 %v2169_v45, %v878_v20  ;;  %v920_v52 = vpop.xlane.xlu2 %919  ;;  %v2213_v44 = vpop.eup %1425 }
 0x2e8   : > { %v942_v43 = vsub.f32 %v2174_v28, %v920_v52 }
 0x2e9   : > { %v951_v53 = vmul.f32 1.442695, %v934_v47  ;;  %931 = vmax.xlane.f32.xlu2 %v2206_v21  ;;  %915 = vmax.xlane.f32.xlu0 %v2209_v33 }
 0x2ea   : > { %v967_v57 = vmul.f32 1.442695, %v942_v43 }
 0x2eb   : > { %1427 = vpow2.f32 %v951_v53 }
 0x2ec   : > { %1429 = vpow2.f32 %v949_v50 }
 0x2ee   : > { %v922_v0 = vpop.xlane.xlu0 %921  ;;  %v906_v5 = vpop.xlane.xlu1 %905 }
 0x2ef   : > { %v943_v41 = vsub.f32 %v887_v1, %v922_v0  ;;  %v935_v26 = vsub.f32 %v867_v54, %v906_v5 }
 0x2f1   : > { %v2218_v6 = vpop.eup %1427  ;;  %v969_v8 = vmul.f32 1.442695, %v943_v41  ;;  %v953_v15 = vmul.f32 1.442695, %v935_v26  ;;  %997 = vadd.xlane.f32.xlu2 %v2213_v44  ;;  %927 = vmax.xlane.f32.xlu0 %v2216_v27 }
 0x2f2   : > { %983 = vadd.xlane.f32.xlu1 %v2218_v6  ;;  %v2224_v55 = vpop.eup %1429 }
 0x2f3   : > { %1431 = vpow2.f32 %v969_v8 }
 0x2f4   : > { %1433 = vpow2.f32 %v953_v15 }
 0x2f5   : > { %1435 = vpow2.f32 %v967_v57 }
 0x2f6   : > { %v908_v9 = vpop.xlane.xlu2 %907  ;;  %v924_v42 = vpop.xlane.xlu1 %923 }
 0x2f7   : > { %v944_v46 = vsub.f32 %v889_v35, %v924_v42  ;;  %v936_v24 = vsub.f32 %v2182_v60, %v908_v9 }
 0x2f9   : > { %v2226_v7 = vpop.eup %1431  ;;  %v971_v18 = vmul.f32 1.442695, %v944_v46  ;;  %981 = vadd.xlane.f32.xlu0 %v2224_v55  ;;  %v955_v32 = vmul.f32 1.442695, %v936_v24 }
 0x2fa   : > { %v2228_v14 = vpop.eup %1433  ;;  %1001 = vadd.xlane.f32.xlu1 %v2226_v7 }
 0x2fb   : > { %985 = vadd.xlane.f32.xlu2 %v2228_v14  ;;  %1437 = vpow2.f32 %v971_v18  ;;  %v2235_v3 = vpop.eup %1435 }
 0x2fc   : > { %1439 = vpow2.f32 %v955_v32 }
 0x2fe   : > { %v910_v49 = vpop.xlane.xlu0 %909  ;;  %v926_v45 = vpop.xlane.xlu2 %925 }
 0x2ff   : > { %v937_v37 = vsub.f32 %v2189_v22, %v910_v49  ;;  %v945_v13 = vsub.f32 %v2186_v17, %v926_v45 }
 0x301   : > { %v957_v30 = vmul.f32 1.442695, %v937_v37  ;;  %v2237_v56 = vpop.eup %1437  ;;  %999 = vadd.xlane.f32.xlu0 %v2235_v3  ;;  %v973_v51 = vmul.f32 1.442695, %v945_v13 }
 0x302   : > { %v2243_v29 = vpop.eup %1439 }
 0x303   : > { %1441 = vpow2.f32 %v957_v30  ;;  %1003 = vadd.xlane.f32.xlu2 %v2237_v56 }
 0x304   : > { %1443 = vpow2.f32 %v973_v51 }
 0x306   : > { %v912_v48 = vpop.xlane.xlu1 %911 }
 0x307   : > { %v938_v28 = vsub.f32 %v2194_v12, %v912_v48 }
 0x309   : > { %v2245_v2 = vpop.eup %1441  ;;  %v959_v63 = vmul.f32 1.442695, %v938_v28  ;;  %987 = vadd.xlane.f32.xlu0 %v2243_v29 }
 0x30a   : > { %989 = vadd.xlane.f32.xlu1 %v2245_v2  ;;  %v2250_v31 = vpop.eup %1443 }
 0x30b   : > { %1445 = vpow2.f32 %v959_v63 }
 0x30e   : > { %v930_v1 = vpop.xlane.xlu1 %929 }
 0x30f   : > { %v947_v54 = vsub.f32 %v2198_v10, %v930_v1 }
 0x311   : > { %v2252_v4 = vpop.eup %1445  ;;  %v977_v35 = vmul.f32 1.442695, %v947_v54  ;;  %1005 = vadd.xlane.f32.xlu0 %v2250_v31 }
 0x312   : > { %991 = vadd.xlane.f32.xlu2 %v2252_v4 }
 0x313   : > { %1447 = vpow2.f32 %v977_v35 }
 0x319   : > { %v2256_v60 = vpop.eup %1447 }
 0x31a   : > { %1009 = vadd.xlane.f32.xlu2 %v2256_v60 }
 0x354   : > { %v914_v34 = vpop.xlane.xlu2 %913 }
 0x355   : > { %v939_v16 = vsub.f32 %v2202_v39, %v914_v34 }
 0x357   : > { %v961_v17 = vmul.f32 1.442695, %v939_v16 }
 0x359   : > { %1449 = vpow2.f32 %v961_v17 }
 0x35c   : > { %v932_v22 = vpop.xlane.xlu2 %931  ;;  %v916_v23 = vpop.xlane.xlu0 %915 }
 0x35d   : > { %v948_v11 = vsub.f32 %v2206_v21, %v932_v22  ;;  %v940_v12 = vsub.f32 %v2209_v33, %v916_v23 }
 0x35f   : > { %v2262_v38 = vpop.eup %1449  ;;  %v979_v10 = vmul.f32 1.442695, %v948_v11  ;;  %v963_v58 = vmul.f32 1.442695, %v940_v12 }
 0x360   : > { %993 = vadd.xlane.f32.xlu0 %v2262_v38 }
 0x361   : > { %1451 = vpow2.f32 %v979_v10 }
 0x362   : > { %1453 = vpow2.f32 %v963_v58 }
 0x364   : > { %v998_v61 = vpop.xlane.xlu2 %997  ;;  %v928_v62 = vpop.xlane.xlu0 %927 }
 0x365   : > { %1455 = vrcp.f32 %v998_v61  ;;  %v984_v39 = vpop.xlane.xlu1 %983  ;;  %v946_v25 = vsub.f32 %v2216_v27, %v928_v62 }
 0x366   : > { %1457 = vrcp.f32 %v984_v39 }
 0x367   : > { %v2266_v19 = vpop.eup %1451  ;;  %v975_v36 = vmul.f32 1.442695, %v946_v25 }
 0x368   : > { %v2268_v40 = vpop.eup %1453  ;;  %1011 = vadd.xlane.f32.xlu0 %v2266_v19 }
 0x369   : > { %995 = vadd.xlane.f32.xlu1 %v2268_v40  ;;  %1459 = vpow2.f32 %v975_v36 }
 0x36b   : > { %v1456_v21 = vpop.eup %1455 }
 0x36c   : > { %v1458_v47 = vpop.eup %1457  ;;  %v1037_v20 = vmul.f32 %v1456_v21, %v2213_v44  ;;  %v982_v53 = vpop.xlane.xlu0 %981 }
 0x36d   : > { %v1030_v33 = vmul.f32 %v1458_v47, %v2218_v6  ;;  %v1002_v59 = vpop.xlane.xlu1 %1001  ;;  %1461 = vrcp.f32 %v982_v53 }
 0x36e   : > { %1053 = vst [vmem:[%s2276_s12 + $0x40] sm:$0xff] %v1037_v20  ;;  %v986_v52 = vpop.xlane.xlu2 %985 }
 0x36f   : > { %1046 = vst [vmem:[%s2276_s12 + $0x8] sm:$0xff] %v1030_v33  ;;  %1463 = vrcp.f32 %v986_v52  ;;  %v2280_v50 = vpop.eup %1459 }
 0x370   : > { %1465 = vrcp.f32 %v1002_v59 }
 0x371   : > { %1007 = vadd.xlane.f32.xlu1 %v2280_v50 }
 0x373   : > { %v1462_v0 = vpop.eup %1461 }
 0x374   : > { %v1029_v41 = vmul.f32 %v1462_v0, %v2224_v55  ;;  %v1000_v26 = vpop.xlane.xlu0 %999 }
 0x375   : > { %v1464_v5 = vpop.eup %1463  ;;  %1467 = vrcp.f32 %v1000_v26 }
 0x376   : > { %v1466_v44 = vpop.eup %1465  ;;  %v1031_v27 = vmul.f32 %v1464_v5, %v2228_v14  ;;  %v1004_v6 = vpop.xlane.xlu2 %1003  ;;  %1045 = vst [vmem:[%s2276_s12] sm:$0xff] %v1029_v41 }
 0x377   : > { %v1039_v8 = vmul.f32 %v1466_v44, %v2226_v7  ;;  %1469 = vrcp.f32 %v1004_v6 }
 0x378   : > { %1047 = vst [vmem:[%s2276_s12 + $0x10] sm:$0xff] %v1031_v27 }
 0x379   : > { %1055 = vst [vmem:[%s2276_s12 + $0x50] sm:$0xff] %v1039_v8 }
 0x37b   : > { %v1468_v15 = vpop.eup %1467 }
 0x37c   : > { %v1038_v9 = vmul.f32 %v1468_v15, %v2235_v3  ;;  %v988_v42 = vpop.xlane.xlu0 %987 }
 0x37d   : > { %v1470_v43 = vpop.eup %1469  ;;  %v990_v57 = vpop.xlane.xlu1 %989  ;;  %1471 = vrcp.f32 %v988_v42 }
 0x37e   : > { %v1040_v46 = vmul.f32 %v1470_v43, %v2237_v56  ;;  %1054 = vst [vmem:[%s2276_s12 + $0x48] sm:$0xff] %v1038_v9  ;;  %1473 = vrcp.f32 %v990_v57 }
 0x380   : > { %1056 = vst [vmem:[%s2276_s12 + $0x58] sm:$0xff] %v1040_v46 }
 0x383   : > { %v1472_v55 = vpop.eup %1471 }
 0x384   : > { %v1474_v7 = vpop.eup %1473  ;;  %v1032_v18 = vmul.f32 %v1472_v55, %v2243_v29  ;;  %v1006_v14 = vpop.xlane.xlu0 %1005 }
 0x385   : > { %v992_v24 = vpop.xlane.xlu2 %991  ;;  %v1033_v32 = vmul.f32 %v1474_v7, %v2245_v2  ;;  %1475 = vrcp.f32 %v1006_v14 }
 0x386   : > { %1048 = vst [vmem:[%s2276_s12 + $0x18] sm:$0xff] %v1032_v18  ;;  %1477 = vrcp.f32 %v992_v24 }
 0x387   : > { %1049 = vst [vmem:[%s2276_s12 + $0x20] sm:$0xff] %v1033_v32 }
 0x38b   : > { %v1476_v49 = vpop.eup %1475 }
 0x38c   : > { %v1478_v37 = vpop.eup %1477  ;;  %v1041_v45 = vmul.f32 %v1476_v49, %v2250_v31 }
 0x38d   : > { %v1010_v3 = vpop.xlane.xlu2 %1009  ;;  %v1034_v30 = vmul.f32 %v1478_v37, %v2252_v4 }
 0x38e   : > { %1479 = vrcp.f32 %v1010_v3  ;;  %1057 = vst [vmem:[%s2276_s12 + $0x60] sm:$0xff] %v1041_v45 }
 0x38f   : > { %1050 = vst [vmem:[%s2276_s12 + $0x28] sm:$0xff] %v1034_v30 }
 0x394   : > { %v1480_v56 = vpop.eup %1479 }
 0x395   : > { %v1043_v13 = vmul.f32 %v1480_v56, %v2256_v60 }
 0x397   : > { %1059 = vst [vmem:[%s2276_s12 + $0x70] sm:$0xff] %v1043_v13 }
 0x3d3   : > { %v994_v51 = vpop.xlane.xlu0 %993 }
 0x3d4   : > { %1481 = vrcp.f32 %v994_v51 }
 0x3da   : > { %v1482_v48 = vpop.eup %1481 }
 0x3db   : > { %v1035_v28 = vmul.f32 %v1482_v48, %v2262_v38  ;;  %v1012_v29 = vpop.xlane.xlu0 %1011 }
 0x3dc   : > { %1483 = vrcp.f32 %v1012_v29  ;;  %v996_v2 = vpop.xlane.xlu1 %995 }
 0x3dd   : > { %1051 = vst [vmem:[%s2276_s12 + $0x30] sm:$0xff] %v1035_v28  ;;  %1485 = vrcp.f32 %v996_v2 }
 0x3e2   : > { %v1484_v63 = vpop.eup %1483 }
 0x3e3   : > { %v1486_v1 = vpop.eup %1485  ;;  %v1044_v54 = vmul.f32 %v1484_v63, %v2266_v19 }
 0x3e4   : > { %v1036_v31 = vmul.f32 %v1486_v1, %v2268_v40  ;;  %v1008_v4 = vpop.xlane.xlu1 %1007 }
 0x3e5   : > { %1060 = vst [vmem:[%s2276_s12 + $0x78] sm:$0xff] %v1044_v54  ;;  %1487 = vrcp.f32 %v1008_v4 }
 0x3e6   : > { %1052 = vst [vmem:[%s2276_s12 + $0x38] sm:$0xff] %v1036_v31 }
 0x3eb   : > { %v1488_v35 = vpop.eup %1487 }
 0x3ec   : > { %v1042_v60 = vmul.f32 %v1488_v35, %v2280_v50 }
 0x3ee   : > { %1058 = vst [vmem:[%s2276_s12 + $0x68] sm:$0xff] %v1042_v60 }
 0x3ef   : > { %1606 = shalt.err (!%p1603_p10)
}
 0x3f0   : > { %s1657_s8 = smov 128   ;;  %s1658_s10 = smov 8  }
 0x3f1   : > { %1296 = dma.vmem_to_hbm [thread:$0]  (%p1755_p3), %s1075_s26, 2048, %s1077_s6, %s1062_s22, %s1657_s8, %s1657_s8, %s1658_s10  }
 0x3f2 PF: > { %s1091_s11 = sand.u32 1, %s1637_s18   ;;  %p2357_p12 = scmp.ge.s32.totalorder %s1649_s21, 2 }
 0x3f3   : > { %s1092_s12 = scalar_lea.sflag [#allocation4], %s1091_s11 }
 0x3f4   : > { %p1310_p13 = pnand %p2357_p12, %p1724_p6 }
 0x3f6   : > { %p1311_p0 = pneg %p1310_p13 }
 0x3f8   : > { %1632 = dma.done.wait (%p1311_p0), %s1092_s12, 2048  }
 0x3f9   : > { %1634 = vsyncadd (%p1311_p0), %s1092_s12, 4294965248  ;;  %p19_p5 = scmp.ge.s32.totalorder %s1745_s14, 4   ;;  %s2358_s18 = smov %s1641_s19 }
 0x3fa   : > { %s2359_s19 = smov %s1645_s20  ;;  %s2360_s20 = smov %s1761_s23 }
 0x3fb   : > { %s2361_s21 = smov %s1745_s14  ;;  %21 = sbr.rel (!%p19_p5) target bundleno = 6 (0x6), region = 93 }
 0x400   :  { %1098 = vsyncpa [#allocation3], 1 }
 0x401   :  { %1100 = vsyncpa [#allocation3 + $0x1], 1 }
 0x402   :  { %1101 = vsyncpa [#allocation6], 1 }
 0x403   :  { %1102 = vsyncpa [#allocation4], 1 }
 0x404   :  { %1104 = vsyncpa [#allocation4 + $0x1], 1 }

</bundles_post_ra>
